<compile_context>
chip_gen: v7x
topology: tpu7x:2x2x1
jax: 0.10.0
libtpu: 0.0.40
codegen_flags: <defaults>
</compile_context>

<pallas_src>
import functools

import jax
import jax.numpy as jnp
from jax.experimental import pallas as pl
from jax.experimental.pallas import tpu as pltpu

LEAKY_SLOPE = 0.01        # torch.nn.LeakyReLU default negative_slope
LANE = 128                # TPU lane width
SUBLANE = 8               # TPU sublane count (f32)
GRIDLESS_MAX_ROWS = 64    # below this, one gridless shot (full-array VMEM)
MAX_TILE_M = 1024         # batch-tile upper bound (DMA-efficiency plateau)


def _round_up(n, m):
    return ((n + m - 1) // m) * m


def _pad2d(a, rows, cols):
    return jnp.pad(a, ((0, rows - a.shape[0]), (0, cols - a.shape[1])))


def _vmem_budget_bytes():
    """~75% of physical VMEM: ~48 MiB on v7x (64 MiB), ~96 MiB on v5e/v6e (128 MiB)."""
    cap = None
    try:
        info = pltpu.get_tpu_info()
        for attr in ("vmem_capacity_bytes", "vmem_size_bytes", "vmem_bytes"):
            v = getattr(info, attr, None)
            if v:
                cap = int(v)
                break
    except Exception:
        cap = None
    if not cap:
        cap = 64 * 1024 * 1024  # conservative fallback (v7x per-TC VMEM)
    return int(cap * 3 // 4)


def _mlp_kernel(*refs, num_layers, act_flags, dout):
    """Fused MLP.  refs = (x_ref, w0, b0, w1, b1, ..., o_ref).

    Static Python loop over layers; the running activation never leaves
    VMEM/vregs.  Matmuls run with lane-padded N (MXU friendly); only the final
    store is narrowed to the true output width.
    """
    x_ref = refs[0]
    o_ref = refs[1 + 2 * num_layers]
    act = x_ref[...]
    for i in range(num_layers):
        w = refs[1 + 2 * i][...]
        b = refs[2 + 2 * i][...]
        acc = jnp.dot(act, w, preferred_element_type=jnp.float32) + b
        if act_flags[i]:
            acc = acc * jnp.where(acc >= 0, 1.0, LEAKY_SLOPE)
        act = acc
    o_ref[...] = act[:, :dout].astype(o_ref.dtype)


def make_sequential_module(params, logits=True, max_tile_m=MAX_TILE_M):
    """Build the fused forward pass.  Parameter padding happens once, here.

    params: list of (W (Din_i, Dout_i), b (1, Dout_i)).
    """
    n = len(params)
    act_flags = tuple((i < n - 1) or (not logits) for i in range(n))

    din = params[0][0].shape[0]
    dims = [din] + [w.shape[1] for w, _ in params]
    dims_p = [_round_up(d, LANE) for d in dims]
    dout = dims[-1]

    # Pad weights/biases once.  The FIRST weight keeps K = din unpadded (x is
    # fed at its true feature width); every output dim is lane-padded for the
    # MXU.  Zero padding is exact through dot / bias / LeakyReLU.
    flat_wb = []
    for i, (w, b) in enumerate(params):
        rows = din if i == 0 else dims_p[i]
        flat_wb.append(_pad2d(jnp.asarray(w, jnp.float32), rows, dims_p[i + 1]))
        flat_wb.append(_pad2d(jnp.asarray(b, jnp.float32).reshape(1, -1), 1,
                              dims_p[i + 1]))
    flat_wb = tuple(flat_wb)
    weight_bytes = sum(int(a.size) * a.dtype.itemsize for a in flat_wb)

    vmem_budget = _vmem_budget_bytes()
    kernel = functools.partial(
        _mlp_kernel, num_layers=n, act_flags=act_flags, dout=dout)

    # Batch rows per grid step that fit the VMEM budget:
    #   single-buffered resident weights + 2x input tiles + 2x output tiles
    #   + ~3 live intermediate activation tiles at the widest (padded) dim.
    max_dim_p = max(dims_p)
    per_row_bytes = 4 * (2 * din + 2 * dout + 3 * max_dim_p)
    avail = max(vmem_budget - weight_bytes, per_row_bytes * SUBLANE)
    budget_tile = int(min(max_tile_m,
                          (avail // per_row_bytes) // SUBLANE * SUBLANE))
    budget_tile = max(SUBLANE, budget_tile)

    def forward(x):
        x = jnp.asarray(x, jnp.float32)
        B = x.shape[0]
        out_shape = jax.ShapeDtypeStruct((B, dout), x.dtype)

        if B <= GRIDLESS_MAX_ROWS:
            # Whole problem in one shot: full-array VMEM blocks, no grid.
            return pl.pallas_call(
                kernel,
                out_shape=out_shape,
                in_specs=[pl.BlockSpec(memory_space=pltpu.MemorySpace.VMEM)]
                * (1 + 2 * n),
                out_specs=pl.BlockSpec(memory_space=pltpu.MemorySpace.VMEM),
                compiler_params=pltpu.CompilerParams(
                    vmem_limit_bytes=vmem_budget),
            )(x, *flat_wb)

        # Batch-tiled "parallel" grid.  Always >= 2 steps (so v7x can shard
        # across both TensorCores); no rounding of B to a full tile — cdiv +
        # partial-block handling covers the ragged last tile.
        tm = min(budget_tile, _round_up(-(-B // 2), SUBLANE))
        assert tm % SUBLANE == 0
        grid = (pl.cdiv(B, tm),)
        in_specs = [pl.BlockSpec((tm, din), lambda i: (i, 0))]
        for _ in range(n):
            # Whole-array VMEM operands: single resident buffer for the
            # constant weights/biases, no per-step DMA, no double-buffering.
            in_specs.append(pl.BlockSpec(memory_space=pltpu.MemorySpace.VMEM))
            in_specs.append(pl.BlockSpec(memory_space=pltpu.MemorySpace.VMEM))
        return pl.pallas_call(
            kernel,
            out_shape=out_shape,
            grid=grid,
            in_specs=in_specs,
            out_specs=pl.BlockSpec((tm, dout), lambda i: (i, 0)),
            compiler_params=pltpu.CompilerParams(
                dimension_semantics=("parallel",),
                vmem_limit_bytes=vmem_budget),
        )(x, *flat_wb)

    return forward


def sequential_module(x, params, logits=True):
    """Convenience one-shot wrapper (pads params on every call; prefer
    make_sequential_module for repeated use)."""
    return make_sequential_module(params, logits=logits)(x)


def init_params(key, channel_dims):
    """Deterministic init mirroring nn.Linear shapes (weights stored transposed)."""
    params = []
    prev = channel_dims[0]
    for dim in channel_dims[1:]:
        key, kw, kb = jax.random.split(key, 3)
        bound = 1.0 / jnp.sqrt(prev)
        w = jax.random.uniform(kw, (prev, dim), jnp.float32, -bound, bound)
        b = jax.random.uniform(kb, (1, dim), jnp.float32, -bound, bound)
        params.append((w, b))
        prev = dim
    return params


def reference(x, params, logits=True):
    n = len(params)
    for i, (w, b) in enumerate(params):
        x = x @ w + b
        if (i < n - 1) or (not logits):
            x = jnp.where(x >= 0, x, LEAKY_SLOPE * x)
    return x


if __name__ == "__main__":
    key = jax.random.PRNGKey(0)
    # Linear(32,64)+LReLU, Linear(64,48)+LReLU, Linear(48,16)
    channel_dims = [32, 64, 48, 16]
    batch = 8

    key, kx, kp = jax.random.split(key, 3)
    x = jax.random.normal(kx, (batch, channel_dims[0]), jnp.float32)
    params = init_params(kp, channel_dims)
    forward = make_sequential_module(params, logits=True)

    # Small-batch path (gridless, fully fused, VMEM-resident activations).
    out = jax.block_until_ready(forward(x))
    ref = reference(x, params, logits=True)
    assert out.shape == (batch, channel_dims[-1])
    assert jnp.allclose(out, ref, atol=1e-5, rtol=1e-5), "mismatch vs reference (small)"

    # Larger-batch path (>=2-step 'parallel' grid, resident weights, ragged
    # last tile handled by partial blocks — no batch rounding, no feature pad).
    key, kx2 = jax.random.split(key)
    x_big = jax.random.normal(kx2, (300, channel_dims[0]), jnp.float32)
    out_big = jax.block_until_ready(forward(x_big))
    ref_big = reference(x_big, params, logits=True)
    assert out_big.shape == (300, channel_dims[-1])
    assert jnp.allclose(out_big, ref_big, atol=1e-5, rtol=1e-5), "mismatch vs reference (big)"

    print("KERNEL_OK")
</pallas_src>

<mosaic_0001>
module attributes {stable_mosaic.version = 11 : i64} {
  func.func @_mlp_kernel(%arg0: memref<8x32xf32, #tpu.memory_space<vmem>>, %arg1: memref<32x128xf32, #tpu.memory_space<vmem>>, %arg2: memref<1x128xf32, #tpu.memory_space<vmem>>, %arg3: memref<128x128xf32, #tpu.memory_space<vmem>>, %arg4: memref<1x128xf32, #tpu.memory_space<vmem>>, %arg5: memref<128x128xf32, #tpu.memory_space<vmem>>, %arg6: memref<1x128xf32, #tpu.memory_space<vmem>>, %arg7: memref<8x16xf32, #tpu.memory_space<vmem>>) attributes {dimension_semantics = [], scalar_prefetch = 0 : i64, scratch_operands = 0 : i64, tpu.core_type = #tpu.core_type<tc>} {
    %c0 = arith.constant 0 : index
    %c0_0 = arith.constant 0 : index
    %0 = vector.load %arg0[%c0, %c0_0] : memref<8x32xf32, #tpu.memory_space<vmem>>, vector<8x32xf32>
    %c0_1 = arith.constant 0 : index
    %c0_2 = arith.constant 0 : index
    %1 = vector.load %arg1[%c0_1, %c0_2] : memref<32x128xf32, #tpu.memory_space<vmem>>, vector<32x128xf32>
    %c0_3 = arith.constant 0 : index
    %c0_4 = arith.constant 0 : index
    %2 = vector.load %arg2[%c0_3, %c0_4] : memref<1x128xf32, #tpu.memory_space<vmem>>, vector<1x128xf32>
    %cst = arith.constant dense<0.000000e+00> : vector<8x128xf32>
    %3 = tpu.matmul %0, %1, %cst {dimension_numbers = #tpu.dot_dimension_numbers<[1], [0], [0], [1], [0, 0, 1, 1], [], []>} : vector<8x32xf32>, vector<32x128xf32>, vector<8x128xf32> -> vector<8x128xf32>
    %4 = vector.broadcast %2 : vector<1x128xf32> to vector<8x128xf32>
    %5 = arith.addf %3, %4 : vector<8x128xf32>
    %cst_5 = arith.constant 0.000000e+00 : f32
    %6 = vector.broadcast %cst_5 : f32 to vector<8x128xf32>
    %7 = arith.cmpf oge, %5, %6 : vector<8x128xf32>
    %cst_6 = arith.constant 1.000000e+00 : f32
    %cst_7 = arith.constant 0.00999999977 : f32
    %8 = vector.broadcast %cst_6 : f32 to vector<8x128xf32>
    %9 = vector.broadcast %cst_7 : f32 to vector<8x128xf32>
    %10 = arith.select %7, %8, %9 : vector<8x128xi1>, vector<8x128xf32>
    %11 = arith.mulf %5, %10 : vector<8x128xf32>
    %c0_8 = arith.constant 0 : index
    %c0_9 = arith.constant 0 : index
    %12 = vector.load %arg3[%c0_8, %c0_9] : memref<128x128xf32, #tpu.memory_space<vmem>>, vector<128x128xf32>
    %c0_10 = arith.constant 0 : index
    %c0_11 = arith.constant 0 : index
    %13 = vector.load %arg4[%c0_10, %c0_11] : memref<1x128xf32, #tpu.memory_space<vmem>>, vector<1x128xf32>
    %cst_12 = arith.constant dense<0.000000e+00> : vector<8x128xf32>
    %14 = tpu.matmul %11, %12, %cst_12 {dimension_numbers = #tpu.dot_dimension_numbers<[1], [0], [0], [1], [0, 0, 1, 1], [], []>} : vector<8x128xf32>, vector<128x128xf32>, vector<8x128xf32> -> vector<8x128xf32>
    %15 = vector.broadcast %13 : vector<1x128xf32> to vector<8x128xf32>
    %16 = arith.addf %14, %15 : vector<8x128xf32>
    %cst_13 = arith.constant 0.000000e+00 : f32
    %17 = vector.broadcast %cst_13 : f32 to vector<8x128xf32>
    %18 = arith.cmpf oge, %16, %17 : vector<8x128xf32>
    %cst_14 = arith.constant 1.000000e+00 : f32
    %cst_15 = arith.constant 0.00999999977 : f32
    %19 = vector.broadcast %cst_14 : f32 to vector<8x128xf32>
    %20 = vector.broadcast %cst_15 : f32 to vector<8x128xf32>
    %21 = arith.select %18, %19, %20 : vector<8x128xi1>, vector<8x128xf32>
    %22 = arith.mulf %16, %21 : vector<8x128xf32>
    %c0_16 = arith.constant 0 : index
    %c0_17 = arith.constant 0 : index
    %23 = vector.load %arg5[%c0_16, %c0_17] : memref<128x128xf32, #tpu.memory_space<vmem>>, vector<128x128xf32>
    %c0_18 = arith.constant 0 : index
    %c0_19 = arith.constant 0 : index
    %24 = vector.load %arg6[%c0_18, %c0_19] : memref<1x128xf32, #tpu.memory_space<vmem>>, vector<1x128xf32>
    %cst_20 = arith.constant dense<0.000000e+00> : vector<8x128xf32>
    %25 = tpu.matmul %22, %23, %cst_20 {dimension_numbers = #tpu.dot_dimension_numbers<[1], [0], [0], [1], [0, 0, 1, 1], [], []>} : vector<8x128xf32>, vector<128x128xf32>, vector<8x128xf32> -> vector<8x128xf32>
    %26 = vector.broadcast %24 : vector<1x128xf32> to vector<8x128xf32>
    %27 = arith.addf %25, %26 : vector<8x128xf32>
    %28 = vector.extract_strided_slice %27 {offsets = [0, 0], sizes = [8, 16], strides = [1, 1]} : vector<8x128xf32> to vector<8x16xf32>
    %c0_21 = arith.constant 0 : index
    %c0_22 = arith.constant 0 : index
    %29 = vector.load %arg7[%c0_21, %c0_22] : memref<8x16xf32, #tpu.memory_space<vmem>>, vector<8x16xf32>
    tpu.vector_store %arg7[%c0_21, %c0_22], %28 {strides = array<i32>} : memref<8x16xf32, #tpu.memory_space<vmem>>, vector<8x16xf32>,
    return
  }
}

</mosaic_0001>

<bundles_post_ra>
// kernel: tpu_custom_call.1
= control target key start
LH: loop header
LB: loop body
LE: loop exit
PB: predicated region body
PF: predicated region fallthrough
CT: control target
= control target key end

     0   :  { %12 = vsyncpa [#allocation3], 0  ;;  %s834_s0 = inlined_call_operand.hbm [shape: f32[8,32], index: 0, kind: input, shape index: {}]   ;;  %s835_s1 = inlined_call_operand.hbm [shape: f32[32,128], index: 1, kind: input, shape index: {}]   ;;  %s836_s2 = inlined_call_operand.vmem [shape: f32[1,128], index: 2, kind: input, shape index: {}]   ;;  %s837_s3 = inlined_call_operand.hbm [shape: f32[128,128], index: 3, kind: input, shape index: {}]   ;;  %s838_s4 = inlined_call_operand.vmem [shape: f32[1,128], index: 4, kind: input, shape index: {}]   ;;  %s839_s5 = inlined_call_operand.hbm [shape: f32[128,128], index: 5, kind: input, shape index: {}]   ;;  %s840_s6 = inlined_call_operand.vmem [shape: f32[1,128], index: 6, kind: input, shape index: {}]   ;;  %s841_s7 = inlined_call_operand.hbm [shape: f32[8,16], index: 7, kind: output, shape index: {}]  }
   0x1   :  { %13 = vsyncpa [#allocation6], 0 }
   0x2   :  { %14 = vsyncpa [#allocation9], 0 }
   0x3   :  { %15 = vsyncpa [#allocation4], 0  ;;  %s684_s24 = smov [#allocation5]   ;;  %s566_s28 = scalar_lea.hbm %s835_s1, 512 }
   0x4   :  { %s31_s25 = sshll.u32 %s684_s24, 4  ;;  %p567_p0 = scmp.ne.s32.totalorder %s835_s1, %s566_s28  ;;  %s32_s25 = int_to_ptr.vmem [resolvable:$true] %s31_s25 }
   0x5   :  { %p570_p1 = scmp.lt.u32.totalorder %s566_s28, %s835_s1 }
   0x7   :  { %p572_p2 = pnand %p570_p1, %p567_p0 }
   0x9   :  { %575 = shalt.err (!%p572_p2)
}
   0xa   :  { %s576_s10 = scalar_lea.vmem %s32_s25, 512  ;;  %p581_p4 = scmp.lt.s32.totalorder %s32_s25, %s32_s25 }
   0xb   :  { %p577_p3 = scmp.ne.s32.totalorder %s32_s25, %s576_s10  ;;  %p582_p5 = scmp.lt.s32.totalorder %s576_s10, %s576_s10 }
   0xd   :  { %p583_p6 = por %p582_p5, %p581_p4 }
   0xf   :  { %p584_p7 = pnand %p583_p6, %p577_p3 }
  0x11   :  { %587 = shalt.err (!%p584_p7)
}
  0x12   :  { %s685_s11 = smov 128   ;;  %s686_s12 = smov 8  }
  0x13   :  { %37 = dma.hbm_to_vmem [thread:$0]  %s835_s1, 512, %s32_s25, [#allocation6], %s685_s11, %s685_s11, %s686_s12  }
  0x14   :  { %s687_s15 = smov [#allocation2]   ;;  %s688_s17 = smov [#allocation7]  }
  0x15   :  { %s22_s16 = sshll.u32 %s687_s15, 4  ;;  %s45_s18 = sshll.u32 %s688_s17, 4  ;;  %s23_s16 = int_to_ptr.vmem [resolvable:$true] %s22_s16  ;;  %s46_s18 = int_to_ptr.vmem [resolvable:$true] %s45_s18 }
  0x16   :  { %s588_s21 = scalar_lea.hbm %s834_s0, 128 }
  0x17   :  { %p589_p8 = scmp.ne.s32.totalorder %s834_s0, %s588_s21  ;;  %p592_p9 = scmp.lt.u32.totalorder %s588_s21, %s834_s0 }
  0x19   :  { %p594_p10 = pnand %p592_p9, %p589_p8 }
  0x1b   :  { %597 = shalt.err (!%p594_p10)
}
  0x1c   :  { %s598_s1 = scalar_lea.vmem %s23_s16, 128  ;;  %p603_p12 = scmp.lt.s32.totalorder %s23_s16, %s23_s16 }
  0x1d   :  { %p599_p11 = scmp.ne.s32.totalorder %s23_s16, %s598_s1  ;;  %p604_p13 = scmp.lt.s32.totalorder %s598_s1, %s598_s1 }
  0x1f   :  { %p605_p0 = por %p604_p13, %p603_p12 }
  0x21   :  { %p606_p1 = pnand %p605_p0, %p599_p11 }
  0x23   :  { %609 = shalt.err (!%p606_p1)
}
  0x24   :  { %25 = dma.hbm_to_vmem [thread:$0]  %s834_s0, 128, %s23_s16, [#allocation3]  }
  0x25   :  { %s610_s30 = scalar_lea.hbm %s837_s3, 2048 }
  0x26   :  { %p611_p2 = scmp.ne.s32.totalorder %s837_s3, %s610_s30  ;;  %p614_p3 = scmp.lt.u32.totalorder %s610_s30, %s837_s3 }
  0x28   :  { %p616_p4 = pnand %p614_p3, %p611_p2 }
  0x2a   :  { %619 = shalt.err (!%p616_p4)
}
  0x2b   :  { %s620_s14 = scalar_lea.vmem %s46_s18, 2048  ;;  %p625_p6 = scmp.lt.s32.totalorder %s46_s18, %s46_s18 }
  0x2c   :  { %p621_p5 = scmp.ne.s32.totalorder %s46_s18, %s620_s14  ;;  %p626_p7 = scmp.lt.s32.totalorder %s620_s14, %s620_s14 }
  0x2e   :  { %p627_p8 = por %p626_p7, %p625_p6 }
  0x30   :  { %p628_p9 = pnand %p627_p8, %p621_p5 }
  0x32   :  { %631 = shalt.err (!%p628_p9)
}
  0x33   :  { %51 = dma.hbm_to_vmem [thread:$0]  %s837_s3, 2048, %s46_s18, [#allocation6], %s685_s11, %s685_s11, %s686_s12  }
  0x34   :  { %s689_s16 = smov [#allocation8]   ;;  %s632_s21 = scalar_lea.hbm %s839_s5, 2048 }
  0x35   :  { %s59_s17 = sshll.u32 %s689_s16, 4  ;;  %p633_p10 = scmp.ne.s32.totalorder %s839_s5, %s632_s21  ;;  %s60_s17 = int_to_ptr.vmem [resolvable:$true] %s59_s17 }
  0x36   :  { %p636_p11 = scmp.lt.u32.totalorder %s632_s21, %s839_s5 }
  0x38   :  { %p638_p12 = pnand %p636_p11, %p633_p10 }
  0x3a   :  { %641 = shalt.err (!%p638_p12)
}
  0x3b   :  { %s642_s1 = scalar_lea.vmem %s60_s17, 2048  ;;  %p647_p0 = scmp.lt.s32.totalorder %s60_s17, %s60_s17 }
  0x3c   :  { %p643_p13 = scmp.ne.s32.totalorder %s60_s17, %s642_s1  ;;  %p648_p1 = scmp.lt.s32.totalorder %s642_s1, %s642_s1 }
  0x3e   :  { %p649_p2 = por %p648_p1, %p647_p0 }
  0x40   :  { %p650_p3 = pnand %p649_p2, %p643_p13 }
  0x42   :  { %653 = shalt.err (!%p650_p3)
}
  0x43   :  { %65 = dma.hbm_to_vmem [thread:$0]  %s839_s5, 2048, %s60_s17, [#allocation9], %s685_s11, %s685_s11, %s686_s12  }
  0x44   :  { %676 = dma.done.wait [#allocation3], 128  }
  0x45   :  { %677 = vsyncadd [#allocation3], 4294967168 }
  0x46   :  { %678 = dma.done.wait [#allocation6], 2560  }
  0x47   :  { %679 = vsyncadd [#allocation6], 4294964736 }
  0x48   :  { %680 = dma.done.wait [#allocation9], 2048  }
  0x49   :  { %681 = vsyncadd [#allocation9], 4294965248  ;;  %v690_v0 = vmov 0.0|0.0   ;;  %vm691_vm0 = vmmov 0   ;;  %v692_v1 = vmov 0.0   ;;  %v81_v2 = vld [vmem:[#allocation5] sm:$0xff] }
  0x4a   :  { %501 = vmatprep.subr.bf16.mxu0 %v690_v0  ;;  %428 = vmatprep.mubr.msk.f32.mxu0 %vm691_vm0, %v692_v1  ;;  %v82_v3 = vld [vmem:[#allocation5 + $0x8] sm:$0xff]  ;;  %v83_v4 = vld [vmem:[#allocation5 + $0x10] sm:$0xff]  ;;  %v84_v6 = vld [vmem:[#allocation5 + $0x18] sm:$0xff]  ;;  %vm92_vm1 = vcmask 261120   ;;  %v693_v55 = vmov 0.01  }
  0x4b   :  { %507 = vmatprep.subr.bf16.mxu1 %v690_v0  ;;  %463 = vmatprep.mubr.msk.f32.mxu1 %vm691_vm0, %v692_v1  ;;  %v502_v5 = vpack.c.bf16 %v82_v3, %v81_v2  ;;  %v169_v7 = vld [vmem:[#allocation7] sm:$0xff]  ;;  %v170_v8 = vld [vmem:[#allocation7 + $0x8] sm:$0xff]  ;;  %v171_v9 = vld [vmem:[#allocation7 + $0x10] sm:$0xff]  ;;  %v505_v11 = vpack.c.bf16 %v84_v6, %v83_v4  ;;  %s694_s28 = smov [#allocation10]   ;;  %vm358_vm4 = vcmask 130048  }
  0x4c   :  { %v172_v10 = vld [vmem:[#allocation7 + $0x18] sm:$0xff]  ;;  %v508_v12 = vpack.c.bf16 %v170_v8, %v169_v7  ;;  %v173_v14 = vld [vmem:[#allocation7 + $0x20] sm:$0xff]  ;;  %v174_v15 = vld [vmem:[#allocation7 + $0x28] sm:$0xff]  ;;  %s366_s29 = sshll.u32 %s694_s28, 4  ;;  %s367_s29 = int_to_ptr.vmem [resolvable:$true] %s366_s29 }
  0x4d   :  { %503 = vmatpush3.bf16.msra.mxu0 %v502_v5  ;;  %v511_v13 = vpack.c.bf16 %v172_v10, %v171_v9  ;;  %v80_v16 = vld [vmem:[#allocation2] sm:$0xff]  ;;  %v514_v17 = vpack.c.bf16 %v174_v15, %v173_v14  ;;  %v175_v18 = vld [vmem:[#allocation7 + $0x30] sm:$0xff]  ;;  %v177_v21 = vld [vmem:[#allocation7 + $0x40] sm:$0xff]  ;;  %p659_p5 = scmp.lt.s32.totalorder %s367_s29, %s367_s29 }
  0x4e   :  { %504 = vmatprep.subr.bf16.mxu0 %v690_v0  ;;  %509 = vmatpush3.bf16.msra.mxu1 %v508_v12  ;;  %v176_v19 = vld [vmem:[#allocation7 + $0x38] sm:$0xff]  ;;  %v178_v22 = vld [vmem:[#allocation7 + $0x48] sm:$0xff]  ;;  %v179_v24 = vld [vmem:[#allocation7 + $0x50] sm:$0xff] }
  0x4f   :  { %510 = vmatprep.subr.bf16.mxu1 %v690_v0  ;;  %v517_v20 = vpack.c.bf16 %v176_v19, %v175_v18  ;;  %v520_v23 = vpack.c.bf16 %v178_v22, %v177_v21  ;;  %v180_v25 = vld [vmem:[#allocation7 + $0x58] sm:$0xff]  ;;  %v181_v27 = vld [vmem:[#allocation7 + $0x60] sm:$0xff]  ;;  %v182_v28 = vld [vmem:[#allocation7 + $0x68] sm:$0xff] }
  0x50   :  { %v523_v26 = vpack.c.bf16 %v180_v25, %v179_v24  ;;  %v526_v29 = vpack.c.bf16 %v182_v28, %v181_v27  ;;  %v183_v30 = vld [vmem:[#allocation7 + $0x70] sm:$0xff]  ;;  %v184_v31 = vld [vmem:[#allocation7 + $0x78] sm:$0xff]  ;;  %v265_v33 = vld [vmem:[#allocation8] sm:$0xff] }
  0x51   :  { %506 = vmatpush3.bf16.msra.mxu0 %v505_v11  ;;  %v529_v32 = vpack.c.bf16 %v184_v31, %v183_v30  ;;  %v266_v34 = vld [vmem:[#allocation8 + $0x8] sm:$0xff]  ;;  %v267_v35 = vld [vmem:[#allocation8 + $0x10] sm:$0xff]  ;;  %v268_v37 = vld [vmem:[#allocation8 + $0x18] sm:$0xff] }
  0x52   :  { %531 = vmatprep.subr.bf16.mxu0 %v690_v0  ;;  %512 = vmatpush3.bf16.msra.mxu1 %v511_v13  ;;  %v532_v36 = vpack.c.bf16 %v266_v34, %v265_v33  ;;  %v535_v38 = vpack.c.bf16 %v268_v37, %v267_v35  ;;  %v269_v39 = vld [vmem:[#allocation8 + $0x20] sm:$0xff]  ;;  %v270_v40 = vld [vmem:[#allocation8 + $0x28] sm:$0xff]  ;;  %v271_v42 = vld [vmem:[#allocation8 + $0x30] sm:$0xff] }
  0x53   :  { %513 = vmatprep.subr.bf16.mxu1 %v690_v0  ;;  %v538_v41 = vpack.c.bf16 %v270_v40, %v269_v39  ;;  %v272_v43 = vld [vmem:[#allocation8 + $0x38] sm:$0xff]  ;;  %v273_v45 = vld [vmem:[#allocation8 + $0x40] sm:$0xff]  ;;  %v274_v46 = vld [vmem:[#allocation8 + $0x48] sm:$0xff] }
  0x54   :  { %429 = vmatmul.mubr.msk.f32.vlgmr.msra.gmra.mrb[0].mxu0 %vm92_vm1, %v80_v16  ;;  %v541_v44 = vpack.c.bf16 %v272_v43, %v271_v42  ;;  %v544_v47 = vpack.c.bf16 %v274_v46, %v273_v45  ;;  %v275_v48 = vld [vmem:[#allocation8 + $0x50] sm:$0xff]  ;;  %v276_v49 = vld [vmem:[#allocation8 + $0x58] sm:$0xff]  ;;  %v277_v58 = vld [vmem:[#allocation8 + $0x60] sm:$0xff] }
  0x55   :  { %498 = vmatprep.mubr.msk.f32.mxu0 %vm691_vm0, %v692_v1  ;;  %533 = vmatpush3.bf16.msra.mxu0 %v532_v36  ;;  %v547_v50 = vpack.c.bf16 %v276_v49, %v275_v48  ;;  %v377_v51 = vld [vmem:[%s836_s2] ss:$0 sm:$0xff]  ;;  %v278_v59 = vld [vmem:[#allocation8 + $0x68] sm:$0xff]  ;;  %v279_v61 = vld [vmem:[#allocation8 + $0x70] sm:$0xff] }
  0x56   :  { %515 = vmatpush3.bf16.msra.mxu1 %v514_v17  ;;  %534 = vmatprep.subr.bf16.mxu0 %v690_v0  ;;  %v550_v60 = vpack.c.bf16 %v278_v59, %v277_v58  ;;  %v280_v62 = vld [vmem:[#allocation8 + $0x78] sm:$0xff] }
  0x57   :  { %516 = vmatprep.subr.bf16.mxu1 %v690_v0  ;;  %v553_v63 = vpack.c.bf16 %v280_v62, %v279_v61  ;;  %v379_v1 = vld [vmem:[%s838_s4] ss:$0 sm:$0xff]  ;;  %s654_s4 = scalar_lea.vmem %s367_s29, 128 }
  0x58   :  { %v380_v7 = vld [vmem:[%s840_s6] ss:$0 sm:$0xff]  ;;  %p655_p4 = scmp.ne.s32.totalorder %s367_s29, %s654_s4  ;;  %p660_p6 = scmp.lt.s32.totalorder %s654_s4, %s654_s4 }
  0x59   :  { %536 = vmatpush3.bf16.msra.mxu0 %v535_v38 }
  0x5a   :  { %518 = vmatpush3.bf16.msra.mxu1 %v517_v20  ;;  %537 = vmatprep.subr.bf16.mxu0 %v690_v0  ;;  %p661_p7 = por %p660_p6, %p659_p5 }
  0x5b   :  { %519 = vmatprep.subr.bf16.mxu1 %v690_v0 }
  0x5c   :  { %p662_p8 = pnand %p661_p7, %p655_p4 }
  0x5d   :  { %539 = vmatpush3.bf16.msra.mxu0 %v538_v41 }
  0x5e   :  { %521 = vmatpush3.bf16.msra.mxu1 %v520_v23  ;;  %540 = vmatprep.subr.bf16.mxu0 %v690_v0 }
  0x5f   :  { %522 = vmatprep.subr.bf16.mxu1 %v690_v0 }
  0x61   :  { %542 = vmatpush3.bf16.msra.mxu0 %v541_v44 }
  0x62   :  { %524 = vmatpush3.bf16.msra.mxu1 %v523_v26  ;;  %543 = vmatprep.subr.bf16.mxu0 %v690_v0 }
  0x63   :  { %525 = vmatprep.subr.bf16.mxu1 %v690_v0 }
  0x65   :  { %545 = vmatpush3.bf16.msra.mxu0 %v544_v47 }
  0x66   :  { %527 = vmatpush3.bf16.msra.mxu1 %v526_v29  ;;  %546 = vmatprep.subr.bf16.mxu0 %v690_v0 }
  0x67   :  { %528 = vmatprep.subr.bf16.mxu1 %v690_v0 }
  0x69   :  { %548 = vmatpush3.bf16.msra.mxu0 %v547_v50 }
  0x6a   :  { %530 = vmatpush3.bf16.msra.mxu1 %v529_v32  ;;  %549 = vmatprep.subr.bf16.mxu0 %v690_v0 }
  0x6d   :  { %551 = vmatpush3.bf16.msra.mxu0 %v550_v60 }
  0x6e   :  { %552 = vmatprep.subr.bf16.mxu0 %v690_v0 }
  0x71   :  { %554 = vmatpush3.bf16.msra.mxu0 %v553_v63 }
 0x127   :  { %v162_v52 = vpop.f32.mrb[0].mxu0 }
 0x128   :  { %v163_v53 = vadd.f32 %v377_v51, %v162_v52  ;;  %v430_v54 = vpop.f32.mrb[1].mxu0 }
 0x12a   :  { %vm166_vm2 = vcmp.ge.f32.partialorder %v163_v53, 0.0 }
 0x12b   :  { %v167_v56 = vsel %vm166_vm2, 1.0, %v693_v55 }
 0x12c   :  { %v168_v57 = vmul.f32 %v167_v56, %v163_v53 }
 0x12e   :  { %464 = vmatmul.mubr.f32.vlgmr.msra.gmra.mrb[0].mxu1 %v168_v57 }
 0x201   :  { %v258_v2 = vpop.f32.mrb[0].mxu1 }
 0x202   :  { %v259_v3 = vadd.f32 %v379_v1, %v258_v2  ;;  %v465_v4 = vpop.f32.mrb[1].mxu1 }
 0x204   :  { %vm262_vm3 = vcmp.ge.f32.partialorder %v259_v3, 0.0 }
 0x205   :  { %v263_v5 = vsel %vm262_vm3, 1.0, %v693_v55 }
 0x206   :  { %v264_v6 = vmul.f32 %v263_v5, %v259_v3 }
 0x208   :  { %499 = vmatmul.mubr.f32.vlgmr.msra.gmra.mrb[2].mxu0 %v264_v6 }
 0x2db   :  { %v354_v0 = vpop.f32.mrb[2].mxu0 }
 0x2dc   :  { %v355_v8 = vadd.f32 %v380_v7, %v354_v0  ;;  %v500_v9 = vpop.f32.mrb[3].mxu0 }
 0x2de   :  { %359 = vst.msk [vmem:[#allocation10] sm:$0xff] %vm358_vm4, %v355_v8 }
 0x2df   :  { %665 = shalt.err (!%p662_p8)
}
 0x2e0   :  { %s666_s9 = scalar_lea.hbm %s841_s7, 128 }
 0x2e1   :  { %p667_p9 = scmp.ne.s32.totalorder %s841_s7, %s666_s9  ;;  %p670_p10 = scmp.lt.u32.totalorder %s666_s9, %s841_s7 }
 0x2e3   :  { %p672_p11 = pnand %p670_p10, %p667_p9 }
 0x2e5   :  { %675 = shalt.err (!%p672_p11)
}
 0x2e6   :  { %369 = dma.vmem_to_hbm [thread:$0]  %s367_s29, 128, %s841_s7, [#allocation4]  }
 0x2e7   :  { %682 = dma.done.wait [#allocation4], 128  }
 0x2e8   :  { %683 = vsyncadd [#allocation4], 4294967168 }
 0x2e9   :  { %373 = vsyncpa [#allocation3], 1 }
 0x2ea   :  { %374 = vsyncpa [#allocation6], 1 }
 0x2eb   :  { %375 = vsyncpa [#allocation9], 1 }
 0x2ec   :  { %376 = vsyncpa [#allocation4], 1 }

</bundles_post_ra>
